<compile_context>
chip_gen: v6e
topology: v6e:2x2x1
jax: 0.10.0
libtpu: 0.0.40
codegen_flags: <defaults>
</compile_context>

<pallas_src>
import math

import jax
import jax.numpy as jnp
import numpy as np
from jax import lax
from jax.experimental import pallas as pl
from jax.experimental.pallas import tpu as pltpu


def _round_up(x, m):
    return ((x + m - 1) // m) * m


# ---------------------------------------------------------------------------
# Kernel 1: logits = tanh(x @ W1^T + b1) . w2 + b2   (row-blocked over B*L)
# ---------------------------------------------------------------------------
def _logits_kernel(x_ref, w1t_ref, b1_ref, w2_ref, b2_ref, out_ref):
    # x_ref: (TM, H) f32   w1t_ref: (H, H) bf16 (pre-transposed W1)
    # b1_ref/w2_ref: (1, H) f32   b2_ref: (1,) f32 in SMEM
    x = x_ref[...].astype(jnp.bfloat16)            # explicit bf16 -> single-pass MXU
    a1 = lax.dot_general(
        x, w1t_ref[...],
        dimension_numbers=(((1,), (0,)), ((), ())),  # plain NN matmul: no per-step RHS relayout
        preferred_element_type=jnp.float32)
    a1 = jnp.tanh(a1 + b1_ref[...])                 # f32 bias + EUP tanh (v5e-safe)
    # H -> 1 projection: exact-f32 VPU multiply + lane reduction (MXU pointless for N=1).
    out_ref[...] = jnp.sum(a1 * w2_ref[...], axis=1, keepdims=True) + b2_ref[0]


def _attention_logits(x_flat, w1t_bf16, b1, w2, b2):
    n, hid = x_flat.shape
    tm = min(512, _round_up(n, 8))                  # 512-row M tiles (256-wide MXU), mult of 8
    grid = pl.cdiv(n, tm)                           # no jnp.pad: boundary block is masked
    vmem = (2 * tm * hid * 4                        # x blocks (f32, double-buffered)
            + 2 * hid * hid * 2                     # resident W1^T (bf16, double-buffered)
            + 4 * hid * 4 + 2 * tm * 4 + (2 << 20))
    out = pl.pallas_call(
        _logits_kernel,
        out_shape=jax.ShapeDtypeStruct((n, 1), jnp.float32),
        grid=(grid,),
        in_specs=[
            pl.BlockSpec((tm, hid), lambda i: (i, 0)),            # x row block (f32)
            pl.BlockSpec((hid, hid), lambda i: (0, 0)),           # W1^T resident in VMEM
            pl.BlockSpec((1, hid), lambda i: (0, 0)),             # b1
            pl.BlockSpec((1, hid), lambda i: (0, 0)),             # w2 (row of Linear(H,1))
            pl.BlockSpec(memory_space=pltpu.MemorySpace.SMEM),    # b2 scalar
        ],
        out_specs=pl.BlockSpec((tm, 1), lambda i: (i, 0)),
        compiler_params=pltpu.CompilerParams(
            dimension_semantics=("parallel",),                    # shard row blocks across cores
            vmem_limit_bytes=int(min(max(vmem, 32 << 20), 128 << 20))),
    )(x_flat, w1t_bf16, b1.reshape(1, hid), w2.reshape(1, hid), b2.reshape(1))
    return out[:, 0]


# ---------------------------------------------------------------------------
# Kernel 3: out[b] = sum_l weight[b, l] * ques_feat[b, l, :]  (+ dropout in train)
# ---------------------------------------------------------------------------
def _make_attend_kernel(q_len, p, train):
    use_dropout = bool(train) and p > 0.0
    inv_keep = 1.0 / (1.0 - p) if use_dropout else 1.0
    # Clamp so (1-p)*2^32 never wraps the uint32 threshold to 0 for tiny p.
    thresh = min(int((1.0 - p) * 4294967296.0), 4294967295) if use_dropout else 0

    def kernel(seed_ref, w_ref, qf_ref, out_ref):
        w = w_ref[...]                                   # (TB, L) f32
        # L-unrolled accumulation: never materializes a (TB, L, H) broadcast product;
        # plain VPU MACs hide under the HBM DMA of the qf block (K3 is memory-bound).
        acc = w[:, 0:1] * qf_ref[:, 0, :]                # (TB, H) f32
        for l in range(1, q_len):
            acc = acc + w[:, l:l + 1] * qf_ref[:, l, :]
        if use_dropout:
            # One seed + one bits draw per (TB, H) block (not per element).
            pltpu.prng_seed(seed_ref[0] + pl.program_id(0))
            bits = pltpu.bitcast(pltpu.prng_random_bits(acc.shape), jnp.uint32)
            keep = bits < jnp.uint32(thresh)
            acc = jnp.where(keep, acc * inv_keep, jnp.zeros_like(acc))
        out_ref[...] = acc

    return kernel


def _attend(weight, ques_feat, *, dropout_p, train, seed):
    batch, q_len, hid = ques_feat.shape
    # VMEM-budgeted batch tile: the double-buffered (TB, L, H) qf block dominates.
    budget = 16 << 20
    per_row = 2 * q_len * hid * 4 + 2 * q_len * 4 + 2 * hid * 4
    tb = max(8, min((budget // per_row) // 8 * 8, 128, _round_up(batch, 8)))
    grid = pl.cdiv(batch, tb)                            # no jnp.pad of ques_feat (saves a full HBM copy)
    seed_arr = jnp.asarray([seed], dtype=jnp.int32)
    vmem = tb * per_row + (2 << 20)

    out = pl.pallas_call(
        _make_attend_kernel(q_len, float(dropout_p), bool(train)),
        out_shape=jax.ShapeDtypeStruct((batch, hid), jnp.float32),
        grid=(grid,),
        in_specs=[
            pl.BlockSpec(memory_space=pltpu.MemorySpace.SMEM),    # seed
            pl.BlockSpec((tb, q_len), lambda i: (i, 0)),          # weight rows
            pl.BlockSpec((tb, q_len, hid), lambda i: (i, 0, 0)),  # ques_feat rows
        ],
        out_specs=pl.BlockSpec((tb, hid), lambda i: (i, 0)),      # lane-dense (H full)
        compiler_params=pltpu.CompilerParams(
            dimension_semantics=("parallel",),
            vmem_limit_bytes=int(min(max(vmem, 32 << 20), 128 << 20))),
    )(seed_arr, weight, ques_feat)
    return out


# ---------------------------------------------------------------------------
# Full forward
# ---------------------------------------------------------------------------
def question_self_attention_forward(ques_feat, w1, b1, w2, b2, *,
                                    dropout_p=0.0, train=False, seed=0):
    """ques_feat: [B, L, H] float32. Returns [B, H] (== PyTorch's [B*1, num_hid])."""
    batch, q_len, hid = ques_feat.shape
    x_flat = ques_feat.reshape(batch * q_len, hid)

    # One-time weight prep (constant-folded / hoisted under jit when weights are static):
    # pre-transposed W1 -> plain NN matmul in-kernel; bf16 -> single-pass MXU + half VMEM.
    w1t_bf16 = w1.T.astype(jnp.bfloat16)

    # (1) K1: attention logit per question-token row.
    att = _attention_logits(x_flat, w1t_bf16, b1, w2, b2).reshape(batch, q_len)

    # (2)+(3) Tiny [L, B] batch-axis softmax + torch-.view reinterpret: ~L*B elements, so a
    # dedicated pallas_call is pure launch overhead (per perf review). XLA fuses the
    # transpose + softmax + reshape; the reshape is a raw row-major reinterpret == torch .view.
    s_t = jax.nn.softmax(att.T, axis=1)                   # [L, B]  (softmax over the batch axis!)
    weight = s_t.reshape(batch, q_len)                    # == .view(-1, 1, L) buffer reinterpret

    # (4) K3: bmm(weight, ques_feat) + dropout.
    return _attend(weight, ques_feat, dropout_p=dropout_p, train=train, seed=seed)


class QuestionSelfAttentionPallas:
    """Mirror of the PyTorch QuestionSelfAttention (eval-mode dropout == identity).

    W1_self_att_q == Linear(num_hid, num_hid) (MultiLayerNet, activation=None)
    W2_self_att_q == Linear(num_hid, 1)
    """

    def __init__(self, num_hid, dropout, key):
        self.num_hid = num_hid
        self.dropout = dropout
        k1, k2, k3, k4 = jax.random.split(key, 4)
        bound = 1.0 / math.sqrt(num_hid)                  # PyTorch Linear default init scale
        self.w1 = jax.random.uniform(k1, (num_hid, num_hid), jnp.float32, -bound, bound)
        self.b1 = jax.random.uniform(k2, (num_hid,), jnp.float32, -bound, bound)
        self.w2 = jax.random.uniform(k3, (1, num_hid), jnp.float32, -bound, bound)
        self.b2 = jax.random.uniform(k4, (1,), jnp.float32, -bound, bound)

    def __call__(self, ques_feat, train=False, seed=0):
        return question_self_attention_forward(
            ques_feat, self.w1, self.b1, self.w2, self.b2,
            dropout_p=self.dropout, train=train, seed=seed)


if __name__ == "__main__":
    key = jax.random.PRNGKey(0)
    k_params, k_x = jax.random.split(key)

    batch, q_len, num_hid, dropout_p = 2, 14, 32, 0.2
    module = QuestionSelfAttentionPallas(num_hid, dropout_p, k_params)
    ques_feat = jax.random.normal(k_x, (batch, q_len, num_hid), dtype=jnp.float32)

    out = module(ques_feat, train=False)                  # eval mode (dropout identity)
    out = jax.block_until_ready(out)

    # Pure-JAX f32 reference of the exact PyTorch forward semantics.
    x = ques_feat.reshape(-1, num_hid)
    a1 = jnp.tanh(jnp.dot(x, module.w1.T, preferred_element_type=jnp.float32) + module.b1)
    att = (jnp.sum(a1 * module.w2, axis=1) + module.b2[0]).reshape(batch, q_len)
    s_t = jax.nn.softmax(att.T, axis=1)                   # softmax over the batch axis
    weight = s_t.reshape(batch, 1, q_len)                 # torch .view buffer reinterpret
    ref = jnp.sum(weight.reshape(batch, q_len)[:, :, None] * ques_feat, axis=1)

    assert out.shape == (batch, num_hid)
    assert out.dtype == jnp.float32
    # Tolerance covers the explicit bf16 MXU matmul vs the f32 XLA reference.
    np.testing.assert_allclose(np.asarray(out), np.asarray(ref), rtol=2e-2, atol=2e-2)

    print("KERNEL_OK")
</pallas_src>

<mosaic_0001>
module attributes {stable_mosaic.version = 11 : i64} {
  func.func @_logits_kernel(%arg0: i32, %arg1: memref<32x32xf32, #tpu.memory_space<vmem>>, %arg2: memref<32x32xbf16, #tpu.memory_space<vmem>>, %arg3: memref<1x32xf32, #tpu.memory_space<vmem>>, %arg4: memref<1x32xf32, #tpu.memory_space<vmem>>, %arg5: memref<1xf32, #tpu.memory_space<smem>>, %arg6: memref<32x1xf32, #tpu.memory_space<vmem>>) attributes {dimension_semantics = [#tpu.dimension_semantics<parallel>], iteration_bounds = array<i64: 1>, scalar_prefetch = 0 : i64, scratch_operands = 0 : i64, tpu.core_type = #tpu.core_type<tc>, window_params = [{transform_indices = @transform_0, window_bounds = array<i64: 32, 32>}, {pipeline_mode = #tpu.pipeline_mode<synchronous>, transform_indices = @transform_1, window_bounds = array<i64: 32, 32>}, {pipeline_mode = #tpu.pipeline_mode<synchronous>, transform_indices = @transform_2, window_bounds = array<i64: 1, 32>}, {pipeline_mode = #tpu.pipeline_mode<synchronous>, transform_indices = @transform_3, window_bounds = array<i64: 1, 32>}, {transform_indices = @transform_4, window_bounds = array<i64: 1>}, {transform_indices = @transform_5, window_bounds = array<i64: 32, 1>}]} {
    %c0 = arith.constant 0 : index
    %c0_0 = arith.constant 0 : index
    %0 = vector.load %arg1[%c0, %c0_0] : memref<32x32xf32, #tpu.memory_space<vmem>>, vector<32x32xf32>
    %1 = arith.truncf %0 : vector<32x32xf32> to vector<32x32xbf16>
    %c0_1 = arith.constant 0 : index
    %c0_2 = arith.constant 0 : index
    %2 = vector.load %arg2[%c0_1, %c0_2] : memref<32x32xbf16, #tpu.memory_space<vmem>>, vector<32x32xbf16>
    %cst = arith.constant dense<0.000000e+00> : vector<32x32xf32>
    %3 = tpu.matmul %1, %2, %cst {dimension_numbers = #tpu.dot_dimension_numbers<[1], [0], [0], [1], [0, 0, 1, 1], [], []>} : vector<32x32xbf16>, vector<32x32xbf16>, vector<32x32xf32> -> vector<32x32xf32>
    %c0_3 = arith.constant 0 : index
    %c0_4 = arith.constant 0 : index
    %4 = vector.load %arg3[%c0_3, %c0_4] : memref<1x32xf32, #tpu.memory_space<vmem>>, vector<1x32xf32>
    %5 = vector.broadcast %4 : vector<1x32xf32> to vector<32x32xf32>
    %6 = arith.addf %3, %5 : vector<32x32xf32>
    %7 = math.tanh %6 : vector<32x32xf32>
    %c0_5 = arith.constant 0 : index
    %c0_6 = arith.constant 0 : index
    %8 = vector.load %arg4[%c0_5, %c0_6] : memref<1x32xf32, #tpu.memory_space<vmem>>, vector<1x32xf32>
    %9 = vector.broadcast %8 : vector<1x32xf32> to vector<32x32xf32>
    %10 = arith.mulf %7, %9 : vector<32x32xf32>
    %cst_7 = arith.constant dense<0.000000e+00> : vector<32xf32>
    %11 = vector.multi_reduction <add>, %10, %cst_7 [1] : vector<32x32xf32> to vector<32xf32>
    %12 = vector.shape_cast %11 : vector<32xf32> to vector<32x1xf32>
    %c0_8 = arith.constant 0 : index
    %13 = memref.load %arg5[%c0_8] : memref<1xf32, #tpu.memory_space<smem>>
    %14 = vector.broadcast %13 : f32 to vector<32x1xf32>
    %15 = arith.addf %12, %14 : vector<32x1xf32>
    %c0_9 = arith.constant 0 : index
    %c0_10 = arith.constant 0 : index
    %16 = vector.load %arg6[%c0_9, %c0_10] : memref<32x1xf32, #tpu.memory_space<vmem>>, vector<32x1xf32>
    tpu.vector_store %arg6[%c0_9, %c0_10], %15 {strides = array<i32>} : memref<32x1xf32, #tpu.memory_space<vmem>>, vector<32x1xf32>,
    return
  }
  func.func @transform_0(%arg0: i32) -> (i32, i32) {
    %c0_i32 = arith.constant 0 : i32
    %c0_i32_0 = arith.constant 0 : i32
    return %arg0, %c0_i32 : i32, i32
  }
  func.func @transform_1(%arg0: i32) -> (i32, i32) {
    %c0_i32 = arith.constant 0 : i32
    %c0_i32_0 = arith.constant 0 : i32
    %c0_i32_1 = arith.constant 0 : i32
    return %c0_i32, %c0_i32_0 : i32, i32
  }
  func.func @transform_2(%arg0: i32) -> (i32, i32) {
    %c0_i32 = arith.constant 0 : i32
    %c0_i32_0 = arith.constant 0 : i32
    %c0_i32_1 = arith.constant 0 : i32
    return %c0_i32, %c0_i32_0 : i32, i32
  }
  func.func @transform_3(%arg0: i32) -> (i32, i32) {
    %c0_i32 = arith.constant 0 : i32
    %c0_i32_0 = arith.constant 0 : i32
    %c0_i32_1 = arith.constant 0 : i32
    return %c0_i32, %c0_i32_0 : i32, i32
  }
  func.func @transform_4(%arg0: i32) -> i32 {
    %c0_i32 = arith.constant 0 : i32
    %c0_i32_0 = arith.constant 0 : i32
    return %c0_i32 : i32
  }
  func.func @transform_5(%arg0: i32) -> (i32, i32) {
    %c0_i32 = arith.constant 0 : i32
    %c0_i32_0 = arith.constant 0 : i32
    return %arg0, %c0_i32 : i32, i32
  }
}

</mosaic_0001>

<bundles_post_ra>
// kernel: tpu_custom_call.1
= control target key start
LH: loop header
LB: loop body
LE: loop exit
PB: predicated region body
PF: predicated region fallthrough
CT: control target
= control target key end

     0   :  { %11 = vsyncpa [#allocation4], 0  ;;  %s326_s0 = inlined_call_operand.hbm [shape: f32[28,32], index: 0, kind: input, shape index: {}]   ;;  %s327_s1 = inlined_call_operand.hbm [shape: bf16[32,32], index: 1, kind: input, shape index: {}]   ;;  %s328_s2 = inlined_call_operand.vmem [shape: f32[1,32], index: 2, kind: input, shape index: {}]   ;;  %s329_s3 = inlined_call_operand.vmem [shape: f32[1,32], index: 3, kind: input, shape index: {}]   ;;  %s330_s4 = inlined_call_operand.<no memory space> [shape: f32[1], index: 4, kind: input, shape index: {}]   ;;  %s331_s5 = inlined_call_operand.vmem [shape: f32[28,1], index: 5, kind: output, shape index: {}]  }
   0x1   :  { %12 = vsyncpa [#allocation6], 0  ;;  %s257_s18 = smov [#allocation3]  }
   0x2   :  { %s18_s19 = sshll.u32 %s257_s18, 4  ;;  %s19_s19 = int_to_ptr.vmem [resolvable:$true] %s18_s19 }
   0x3   :  { %s221_s20 = scalar_lea.vmem %s19_s19, 512  ;;  %p226_p1 = scmp.lt.s32.totalorder %s19_s19, %s19_s19 }
   0x4   :  { %p222_p0 = scmp.ne.s32.totalorder %s19_s19, %s221_s20  ;;  %p227_p2 = scmp.lt.s32.totalorder %s221_s20, %s221_s20 }
   0x6   :  { %p228_p3 = por %p227_p2, %p226_p1 }
   0x8   :  { %p229_p4 = pnand %p228_p3, %p222_p0 }
   0xa   :  { %232 = shalt.err (!%p229_p4)
}
   0xb   :  { %s258_s21 = smov 128   ;;  %s259_s22 = smov 8  }
   0xc   :  { %24 = dma.hbm_to_vmem [thread:$0]  %s326_s0, 512, %s19_s19, [#allocation4], %s258_s21, %s258_s21, %s259_s22  }
   0xd   :  { %s260_s25 = smov [#allocation5]  }
   0xe   :  { %s30_s26 = sshll.u32 %s260_s25, 4  ;;  %s31_s26 = int_to_ptr.vmem [resolvable:$true] %s30_s26 }
   0xf   :  { %s241_s27 = scalar_lea.vmem %s31_s26, 256  ;;  %p246_p6 = scmp.lt.s32.totalorder %s31_s26, %s31_s26 }
  0x10   :  { %p242_p5 = scmp.ne.s32.totalorder %s31_s26, %s241_s27  ;;  %p247_p7 = scmp.lt.s32.totalorder %s241_s27, %s241_s27 }
  0x12   :  { %p248_p8 = por %p247_p7, %p246_p6 }
  0x14   :  { %p249_p9 = pnand %p248_p8, %p242_p5 }
  0x16   :  { %252 = shalt.err (!%p249_p9)
}
  0x17   :  { %s261_s28 = smov 64   ;;  %s262_s29 = smov 4  }
  0x18   :  { %36 = dma.hbm_to_vmem [thread:$0]  %s327_s1, 256, %s31_s26, [#allocation6], %s261_s28, %s261_s28, %s262_s29  }
  0x19   :  { %253 = dma.done.wait [#allocation4], 512  }
  0x1a   :  { %254 = vsyncadd [#allocation4], 4294966784 }
  0x1b   :  { %255 = dma.done.wait [#allocation6], 256  }
  0x1c   :  { %256 = vsyncadd [#allocation6], 4294967040  ;;  %v203_v0 = vld [vmem:[#allocation5 + $0x8] sm:$0xff]   ;;  %v204_v1 = vld [vmem:[#allocation5] sm:$0xff]   ;;  %vm79_vm0 = vcmask 261120   ;;  %v163_v30 = vstv %s330_s4  ;;  %vm168_vm1 = vcmask 7168  }
  0x1d   :  { %189 = vmatprep.subr.bf16.mxu0 %v203_v0  ;;  %v50_v2 = vld [vmem:[#allocation3] sm:$0xff]  ;;  %v51_v3 = vld [vmem:[#allocation3 + $0x8] sm:$0xff]  ;;  %v52_v5 = vld [vmem:[#allocation3 + $0x10] sm:$0xff] }
  0x1e   :  { %190 = vmatpush3.bf16.msra.mxu0 %v203_v0  ;;  %v54_v4 = vpack.c.bf16 %v51_v3, %v50_v2  ;;  %v53_v6 = vld [vmem:[#allocation3 + $0x18] sm:$0xff]  ;;  %v179_v8 = vld [vmem:[%s328_s2] ss:$0 sm:$0xff] }
  0x1f   :  { %191 = vmatprep.subr.bf16.mxu0 %v204_v1  ;;  %v55_v7 = vpack.c.bf16 %v53_v6, %v52_v5  ;;  %v184_v17 = vld [vmem:[%s329_s3] ss:$0 sm:$0xff] }
  0x20   :  { %193 = vmatprep.mubr.msk.bf16.mxu0 %vm79_vm0, %v54_v4 }
  0x22   :  { %192 = vmatpush3.bf16.msra.mxu0 %v204_v1 }
  0x25   :  { %194 = vmatmul.mubr.msk.bf16.vlgmr.msra.gmra.mxu0 %vm79_vm0, %v55_v7 }
  0xe5   :  { %v195_v9 = vpop.f32.mrf.mxu0 }
  0xe6   :  { %v129_v10 = vadd.f32 %v195_v9, %v179_v8 }
  0xe7   :  { %v120_v11 = vpop.f32.mrf.mxu0 }
  0xe8   :  { %205 = vtanh.f32 %v129_v10  ;;  %v121_v12 = vadd.f32 %v179_v8, %v120_v11 }
  0xe9   :  { %v196_v13 = vpop.f32.mrf.mxu0 }
  0xea   :  { %207 = vtanh.f32 %v121_v12  ;;  %v132_v14 = vadd.f32 %v196_v13, %v179_v8 }
  0xeb   :  { %v123_v15 = vpop.f32.mrf.mxu0 }
  0xec   :  { %209 = vtanh.f32 %v132_v14  ;;  %v124_v16 = vadd.f32 %v179_v8, %v123_v15 }
  0xee   :  { %211 = vtanh.f32 %v124_v16 }
  0xf5   :  { %v206_v18 = vpop.eup %205 }
  0xf6   :  { %v148_v19 = vmul.f32 %v206_v18, %v184_v17 }
  0xf7   :  { %v208_v20 = vpop.eup %207 }
  0xf8   :  { %v156_v21 = vsel %vm79_vm0, %v148_v19, 0.0  ;;  %v146_v22 = vmul.f32 %v208_v20, %v184_v17 }
  0xf9   :  { %v210_v23 = vpop.eup %209  ;;  %157 = vadd.xlane.f32.xlu1 %v156_v21 }
  0xfa   :  { %v150_v24 = vsel %vm79_vm0, %v146_v22, 0.0  ;;  %v149_v25 = vmul.f32 %v210_v23, %v184_v17 }
  0xfb   :  { %v212_v26 = vpop.eup %211  ;;  %151 = vadd.xlane.f32.xlu0 %v150_v24 }
  0xfc   :  { %v159_v27 = vsel %vm79_vm0, %v149_v25, 0.0  ;;  %v147_v28 = vmul.f32 %v212_v26, %v184_v17 }
  0xfd   :  { %160 = vadd.xlane.f32.xlu1 %v159_v27 }
  0xfe   :  { %v153_v29 = vsel %vm79_vm0, %v147_v28, 0.0 }
  0xff   :  { %154 = vadd.xlane.f32.xlu0 %v153_v29 }
 0x182   :  { %v158_v31 = vpop.xlane.xlu1 %157 }
 0x183   :  { %v166_v32 = vadd.f32 %v163_v30, %v158_v31 }
 0x184   :  { %v152_v33 = vpop.xlane.xlu0 %151 }
 0x185   :  { %171 = vst.msk [vmem:[%s331_s5 + $0x10] sm:$0xff] %vm168_vm1, %v166_v32  ;;  %v164_v34 = vadd.f32 %v163_v30, %v152_v33 }
 0x186   :  { %v161_v35 = vpop.xlane.xlu1 %160 }
 0x187   :  { %169 = vst.msk [vmem:[%s331_s5] sm:$0xff] %vm168_vm1, %v164_v34  ;;  %v167_v36 = vadd.f32 %v163_v30, %v161_v35 }
 0x188   :  { %v155_v37 = vpop.xlane.xlu0 %154 }
 0x189   :  { %172 = vst.msk [vmem:[%s331_s5 + $0x18] sm:$0xff] %vm168_vm1, %v167_v36  ;;  %v165_v38 = vadd.f32 %v163_v30, %v155_v37 }
 0x18b   :  { %170 = vst.msk [vmem:[%s331_s5 + $0x8] sm:$0xff] %vm168_vm1, %v165_v38 }
 0x18c   :  { %177 = vsyncpa [#allocation4], 1 }
 0x18d   :  { %178 = vsyncpa [#allocation6], 1 }

</bundles_post_ra>
